<compile_context>
chip_gen: v7x
topology: tpu7x:2x2x1
jax: 0.10.0
libtpu: 0.0.40
codegen_flags: <defaults>
</compile_context>

<pallas_src>
import functools

import jax
import jax.numpy as jnp
from jax import lax
from jax.experimental import pallas as pl
from jax.experimental.pallas import tpu as pltpu

_LANE = 128


# ----------------------------------------------------------------------------
# Padding / tiling helpers
# ----------------------------------------------------------------------------
def _pad128(n: int) -> int:
    return ((n + _LANE - 1) // _LANE) * _LANE


def _pad_to(x, shape):
    pads = [(0, t - s) for s, t in zip(x.shape, shape)]
    return jnp.pad(x, pads)


def _batch_tile(B: int) -> int:
    # Full-array block for tiny batches; multiple-of-8 tiles otherwise so the
    # (8,128) rule holds and v7x can split the parallel batch grid across TCs.
    if B <= 8:
        return B
    for t in (128, 64, 32, 16, 8):
        if B % t == 0:
            return t
    return B


# ----------------------------------------------------------------------------
# Fused kernel bodies (everything stays in VMEM / vregs)
# ----------------------------------------------------------------------------
def _heads(bar_ref, img_ref, wbar_ref, bbar_ref, wimg_ref, bimg_ref):
    # Stub submodel heads: flatten + Linear (bf16 weights, f32 accumulate).
    bar_out = jnp.dot(bar_ref[...].astype(jnp.bfloat16), wbar_ref[...],
                      preferred_element_type=jnp.float32) + bbar_ref[...]
    img_out = jnp.dot(img_ref[...].astype(jnp.bfloat16), wimg_ref[...],
                      preferred_element_type=jnp.float32) + bimg_ref[...]
    return bar_out, img_out


def _fused_dense_kernel(bar_ref, img_ref, wbar_ref, bbar_ref, wimg_ref, bimg_ref,
                        wfc1b_ref, wfc1i_ref, bfc1_ref, *rest,
                        num_classes, two_layer):
    if two_layer:
        wfc2_ref, bfc2_ref, fused_ref, barout_ref, imgout_ref = rest
    else:
        fused_ref, barout_ref, imgout_ref = rest

    bar_out, img_out = _heads(bar_ref, img_ref, wbar_ref, bbar_ref,
                              wimg_ref, bimg_ref)
    barout_ref[...] = bar_out
    imgout_ref[...] = img_out

    # Concat-free classifier: cat([bar, img]) @ W1 == bar @ W1_bar + img @ W1_img.
    # Padded columns of bar_out/img_out are exactly 0 and meet zero rows of the
    # padded fc1 weights, so the result is exact.
    z = (jnp.dot(bar_out.astype(jnp.bfloat16), wfc1b_ref[...],
                 preferred_element_type=jnp.float32)
         + jnp.dot(img_out.astype(jnp.bfloat16), wfc1i_ref[...],
                   preferred_element_type=jnp.float32)
         + bfc1_ref[...])

    if two_layer:
        h = jnp.maximum(z, 0.0)
        # TODO(synk): nn.Dropout() is identity in eval mode; training-mode dropout not modelled.
        z = jnp.dot(h.astype(jnp.bfloat16), wfc2_ref[...],
                    preferred_element_type=jnp.float32) + bfc2_ref[...]

    # Softmax over the real class columns only (padded lanes forced to 0).
    col = lax.broadcasted_iota(jnp.int32, z.shape, dimension=1)
    z = jnp.where(col < num_classes, z, -jnp.inf)
    m = jnp.max(z, axis=-1, keepdims=True)
    e = jnp.exp(z - m)
    s = jnp.sum(e, axis=-1, keepdims=True)
    fused_ref[...] = (e * pl.reciprocal(s, approx=True)).astype(fused_ref.dtype)


def _fused_slf_kernel(bar_ref, img_ref, wbar_ref, bbar_ref, wimg_ref, bimg_ref,
                      fused_ref, barout_ref, imgout_ref, *, slf_mode):
    bar_out, img_out = _heads(bar_ref, img_ref, wbar_ref, bbar_ref,
                              wimg_ref, bimg_ref)
    barout_ref[...] = bar_out
    imgout_ref[...] = img_out

    if slf_mode == "sum_score":
        fused = (bar_out + img_out) * 0.5
    elif slf_mode == "max_score":
        fused = jnp.maximum(bar_out, img_out)  # torch.stack(...).max(dim=0).values
    else:
        fused = bar_out * img_out              # product_score / any other string

    if slf_mode in ("max_score", "product_score"):
        # Padded lanes are exactly 0, so the row sum equals the sum over the
        # real num_classes columns. NOTE: semantics match PyTorch exactly (no
        # epsilon guard); a zero/negative denominator can only come from what
        # the submodels emit (here: raw stub logits).
        denom = jnp.sum(fused, axis=-1, keepdims=True)
        fused = fused * pl.reciprocal(denom, approx=True)

    fused_ref[...] = fused.astype(fused_ref.dtype)


def _heads_kernel(bar_ref, img_ref, wbar_ref, bbar_ref, wimg_ref, bimg_ref,
                  barout_ref, imgout_ref):
    bar_out, img_out = _heads(bar_ref, img_ref, wbar_ref, bbar_ref,
                              wimg_ref, bimg_ref)
    barout_ref[...] = bar_out
    imgout_ref[...] = img_out


# ----------------------------------------------------------------------------
# Single pallas_call wrapper
# ----------------------------------------------------------------------------
def _fused_call(kernel, bar_flat, img_flat, weights, out_dims, *,
                flops, transcendentals):
    B = bar_flat.shape[0]
    tb = _batch_tile(B)
    grid = (B // tb,)

    def batched_spec(arr):
        return pl.BlockSpec((tb, arr.shape[1]), lambda i: (i, 0))

    def weight_spec(arr):
        return pl.BlockSpec(arr.shape, lambda i: (0, 0))

    in_specs = [batched_spec(bar_flat), batched_spec(img_flat)]
    in_specs += [weight_spec(w) for w in weights]

    out_specs = tuple(pl.BlockSpec((tb, d), lambda i: (i, 0)) for d in out_dims)
    out_shape = tuple(jax.ShapeDtypeStruct((B, d), jnp.float32) for d in out_dims)

    bytes_accessed = (sum(int(a.size) * a.dtype.itemsize
                          for a in [bar_flat, img_flat] + list(weights))
                      + B * sum(out_dims) * 4)
    cost = pl.CostEstimate(flops=int(flops),
                           transcendentals=int(transcendentals),
                           bytes_accessed=int(bytes_accessed))

    return pl.pallas_call(
        kernel,
        grid=grid,
        in_specs=in_specs,
        out_specs=out_specs,
        out_shape=out_shape,
        compiler_params=pltpu.CompilerParams(dimension_semantics=("parallel",)),
        cost_estimate=cost,
    )(bar_flat, img_flat, *weights)


# ----------------------------------------------------------------------------
# Module
# ----------------------------------------------------------------------------
class BarcodeJPGFusePallas:
    """Pallas re-implementation of BarcodeJPGFuse.forward (eval mode)."""

    NUM_NEURONS = {"Coccinellidae": 784, "Lycaenidae": 816,
                   "Poaceae": 790, "Asteraceae": 794}

    def __init__(self, key, *, job_id, barcode_flat_dim, image_flat_dim,
                 num_classes, classifier_mode, slf_mode=None,
                 b_ftrs=32, i_ftrs=32):
        self.job_id = job_id
        self.num_classes = num_classes
        self.classifier_mode = classifier_mode
        self.slf_mode = slf_mode

        keys = jax.random.split(key, 8)
        scale = jnp.float32(0.05)

        # When fusing at score level the submodels emit class scores;
        # otherwise they emit feature vectors for the shared classifier.
        bar_out = num_classes if slf_mode is not None else b_ftrs
        img_out = num_classes if slf_mode is not None else i_ftrs
        self.bar_out_dim, self.img_out_dim = bar_out, img_out
        self.bar_out_pad, self.img_out_pad = _pad128(bar_out), _pad128(img_out)
        self.num_classes_pad = _pad128(num_classes)

        # TODO(synk): the BarcodeJPGBar CNN and ResNet50 backbones are external
        # submodules; they are stubbed here as deterministic flatten+Linear
        # heads (the fusion/classifier compute of this module IS translated).
        w_bar = scale * jax.random.normal(keys[0], (barcode_flat_dim, bar_out), jnp.float32)
        b_bar = scale * jax.random.normal(keys[1], (bar_out,), jnp.float32)
        w_img = scale * jax.random.normal(keys[2], (image_flat_dim, img_out), jnp.float32)
        b_img = scale * jax.random.normal(keys[3], (img_out,), jnp.float32)

        # Zero-pad output columns to multiples of 128 (lane-dense stores);
        # bf16 weights, f32 biases.
        self.w_bar = _pad_to(w_bar, (barcode_flat_dim, self.bar_out_pad)).astype(jnp.bfloat16)
        self.b_bar = _pad_to(b_bar[None, :], (1, self.bar_out_pad))
        self.w_img = _pad_to(w_img, (image_flat_dim, self.img_out_pad)).astype(jnp.bfloat16)
        self.b_img = _pad_to(b_img[None, :], (1, self.img_out_pad))

        self.two_layer = False
        if slf_mode is None and classifier_mode in ("dense_late", "dense_mid"):
            input_ftrs = b_ftrs + i_ftrs
            if classifier_mode == "dense_late":
                n1 = num_classes
            else:
                n1 = self.NUM_NEURONS.get(job_id, 794)
                self.two_layer = True
            n1_pad = _pad128(n1)
            self.n1_pad = n1_pad

            w_fc1 = scale * jax.random.normal(keys[4], (input_ftrs, n1), jnp.float32)
            b_fc1 = scale * jax.random.normal(keys[5], (n1,), jnp.float32)
            # Pre-split fc1 so the kernel never needs the concat:
            #   cat([bar, img]) @ W1 == bar @ W1[:b_ftrs] + img @ W1[b_ftrs:]
            self.w_fc1_bar = _pad_to(w_fc1[:b_ftrs], (self.bar_out_pad, n1_pad)).astype(jnp.bfloat16)
            self.w_fc1_img = _pad_to(w_fc1[b_ftrs:], (self.img_out_pad, n1_pad)).astype(jnp.bfloat16)
            self.b_fc1 = _pad_to(b_fc1[None, :], (1, n1_pad))

            if self.two_layer:
                w_fc2 = scale * jax.random.normal(keys[6], (n1, num_classes), jnp.float32)
                b_fc2 = scale * jax.random.normal(keys[7], (num_classes,), jnp.float32)
                self.w_fc2 = _pad_to(w_fc2, (n1_pad, self.num_classes_pad)).astype(jnp.bfloat16)
                self.b_fc2 = _pad_to(b_fc2[None, :], (1, self.num_classes_pad))

    def __call__(self, barcode, image):
        B = barcode.shape[0]
        bar_flat = barcode.reshape(B, -1).astype(jnp.float32)   # glue
        img_flat = image.reshape(B, -1).astype(jnp.float32)     # NCHW flatten (glue)
        Dbar, Dimg = bar_flat.shape[1], img_flat.shape[1]
        head_flops = 2 * B * (Dbar * self.bar_out_pad + Dimg * self.img_out_pad)

        if self.slf_mode is not None:
            # Score-level fusion (+ row normalization for max/product), one kernel.
            weights = [self.w_bar, self.b_bar, self.w_img, self.b_img]
            kernel = functools.partial(_fused_slf_kernel, slf_mode=self.slf_mode)
            fused_pad, bar_pad, img_pad = _fused_call(
                kernel, bar_flat, img_flat, weights,
                (self.num_classes_pad, self.bar_out_pad, self.img_out_pad),
                flops=head_flops, transcendentals=B)
            fused = fused_pad[:, :self.num_classes]
        elif self.classifier_mode in ("dense_late", "dense_mid"):
            weights = [self.w_bar, self.b_bar, self.w_img, self.b_img,
                       self.w_fc1_bar, self.w_fc1_img, self.b_fc1]
            flops = head_flops + 2 * B * (self.bar_out_pad + self.img_out_pad) * self.n1_pad
            if self.two_layer:
                weights += [self.w_fc2, self.b_fc2]
                flops += 2 * B * self.n1_pad * self.num_classes_pad
            kernel = functools.partial(_fused_dense_kernel,
                                       num_classes=self.num_classes,
                                       two_layer=self.two_layer)
            fused_pad, bar_pad, img_pad = _fused_call(
                kernel, bar_flat, img_flat, weights,
                (self.num_classes_pad, self.bar_out_pad, self.img_out_pad),
                flops=flops, transcendentals=B * (self.num_classes_pad + 1))
            fused = fused_pad[:, :self.num_classes]
        else:
            # Identity classifier: fused = cat(bar_out, img_out) (tiny, done in glue).
            weights = [self.w_bar, self.b_bar, self.w_img, self.b_img]
            bar_pad, img_pad = _fused_call(
                _heads_kernel, bar_flat, img_flat, weights,
                (self.bar_out_pad, self.img_out_pad),
                flops=head_flops, transcendentals=0)
            fused = jnp.concatenate([bar_pad[:, :self.bar_out_dim],
                                     img_pad[:, :self.img_out_dim]], axis=1)

        bar_out = bar_pad[:, :self.bar_out_dim]
        img_out = img_pad[:, :self.img_out_dim]
        return fused, bar_out, img_out


# ----------------------------------------------------------------------------
# Demo / smoke test
# ----------------------------------------------------------------------------
if __name__ == "__main__":
    key = jax.random.PRNGKey(0)
    kp, kb, ki = jax.random.split(key, 3)

    B = 2
    num_classes = 10
    barcode = jax.random.normal(kb, (B, 4, 16), jnp.float32)     # [B, C, L]
    image = jax.random.normal(ki, (B, 3, 16, 16), jnp.float32)   # NCHW

    # 1) Late fusion: heads + concat-free Linear + masked softmax, single kernel.
    model = BarcodeJPGFusePallas(
        kp, job_id="Poaceae",
        barcode_flat_dim=4 * 16, image_flat_dim=3 * 16 * 16,
        num_classes=num_classes, classifier_mode="dense_late", slf_mode=None)
    fused, bar_out, img_out = model(barcode, image)
    jax.block_until_ready((fused, bar_out, img_out))
    assert fused.shape == (B, num_classes)
    assert bar_out.shape == (B, 32) and img_out.shape == (B, 32)

    # 2) dense_mid: two-layer classifier (Linear+ReLU+Linear+Softmax), same single kernel.
    model_mid = BarcodeJPGFusePallas(
        kp, job_id="Poaceae",
        barcode_flat_dim=4 * 16, image_flat_dim=3 * 16 * 16,
        num_classes=num_classes, classifier_mode="dense_mid", slf_mode=None)
    fused_mid, _, _ = model_mid(barcode, image)
    jax.block_until_ready(fused_mid)
    assert fused_mid.shape == (B, num_classes)

    # 3) Score-level fusion branch (product_score): elementwise fusion +
    #    row-normalization fused with the heads in one kernel.
    model2 = BarcodeJPGFusePallas(
        kp, job_id="Poaceae",
        barcode_flat_dim=4 * 16, image_flat_dim=3 * 16 * 16,
        num_classes=num_classes, classifier_mode="dense_late",
        slf_mode="product_score")
    fused2, bar_out2, img_out2 = model2(barcode, image)
    jax.block_until_ready(fused2)
    assert fused2.shape == (B, num_classes)
    assert bar_out2.shape == (B, num_classes)

    print("KERNEL_OK")
</pallas_src>

<mosaic_0001>
module attributes {stable_mosaic.version = 11 : i64} {
  func.func @_fused_dense_kernel(%arg0: i32, %arg1: memref<2x64xf32, #tpu.memory_space<vmem>>, %arg2: memref<2x768xf32, #tpu.memory_space<vmem>>, %arg3: memref<64x128xbf16, #tpu.memory_space<vmem>>, %arg4: memref<1x128xf32, #tpu.memory_space<vmem>>, %arg5: memref<768x128xbf16, #tpu.memory_space<vmem>>, %arg6: memref<1x128xf32, #tpu.memory_space<vmem>>, %arg7: memref<128x128xbf16, #tpu.memory_space<vmem>>, %arg8: memref<128x128xbf16, #tpu.memory_space<vmem>>, %arg9: memref<1x128xf32, #tpu.memory_space<vmem>>, %arg10: memref<2x128xf32, #tpu.memory_space<vmem>>, %arg11: memref<2x128xf32, #tpu.memory_space<vmem>>, %arg12: memref<2x128xf32, #tpu.memory_space<vmem>>) attributes {dimension_semantics = [#tpu.dimension_semantics<parallel>], iteration_bounds = array<i64: 1>, scalar_prefetch = 0 : i64, scratch_operands = 0 : i64, tpu.core_type = #tpu.core_type<tc>, window_params = [{transform_indices = @transform_0, window_bounds = array<i64: 2, 64>}, {transform_indices = @transform_1, window_bounds = array<i64: 2, 768>}, {pipeline_mode = #tpu.pipeline_mode<synchronous>, transform_indices = @transform_2, window_bounds = array<i64: 64, 128>}, {pipeline_mode = #tpu.pipeline_mode<synchronous>, transform_indices = @transform_3, window_bounds = array<i64: 1, 128>}, {pipeline_mode = #tpu.pipeline_mode<synchronous>, transform_indices = @transform_4, window_bounds = array<i64: 768, 128>}, {pipeline_mode = #tpu.pipeline_mode<synchronous>, transform_indices = @transform_5, window_bounds = array<i64: 1, 128>}, {pipeline_mode = #tpu.pipeline_mode<synchronous>, transform_indices = @transform_6, window_bounds = array<i64: 128, 128>}, {pipeline_mode = #tpu.pipeline_mode<synchronous>, transform_indices = @transform_7, window_bounds = array<i64: 128, 128>}, {pipeline_mode = #tpu.pipeline_mode<synchronous>, transform_indices = @transform_8, window_bounds = array<i64: 1, 128>}, {transform_indices = @transform_9, window_bounds = array<i64: 2, 128>}, {transform_indices = @transform_10, window_bounds = array<i64: 2, 128>}, {transform_indices = @transform_11, window_bounds = array<i64: 2, 128>}]} {
    %c0 = arith.constant 0 : index
    %c0_0 = arith.constant 0 : index
    %0 = vector.load %arg1[%c0, %c0_0] : memref<2x64xf32, #tpu.memory_space<vmem>>, vector<2x64xf32>
    %1 = arith.truncf %0 : vector<2x64xf32> to vector<2x64xbf16>
    %c0_1 = arith.constant 0 : index
    %c0_2 = arith.constant 0 : index
    %2 = vector.load %arg3[%c0_1, %c0_2] : memref<64x128xbf16, #tpu.memory_space<vmem>>, vector<64x128xbf16>
    %cst = arith.constant dense<0.000000e+00> : vector<2x128xf32>
    %3 = tpu.matmul %1, %2, %cst {dimension_numbers = #tpu.dot_dimension_numbers<[1], [0], [0], [1], [0, 0, 1, 1], [], []>} : vector<2x64xbf16>, vector<64x128xbf16>, vector<2x128xf32> -> vector<2x128xf32>
    %c0_3 = arith.constant 0 : index
    %c0_4 = arith.constant 0 : index
    %4 = vector.load %arg4[%c0_3, %c0_4] : memref<1x128xf32, #tpu.memory_space<vmem>>, vector<1x128xf32>
    %5 = vector.broadcast %4 : vector<1x128xf32> to vector<2x128xf32>
    %6 = arith.addf %3, %5 : vector<2x128xf32>
    %c0_5 = arith.constant 0 : index
    %c0_6 = arith.constant 0 : index
    %7 = vector.load %arg2[%c0_5, %c0_6] : memref<2x768xf32, #tpu.memory_space<vmem>>, vector<2x768xf32>
    %8 = arith.truncf %7 : vector<2x768xf32> to vector<2x768xbf16>
    %c0_7 = arith.constant 0 : index
    %c0_8 = arith.constant 0 : index
    %9 = vector.load %arg5[%c0_7, %c0_8] : memref<768x128xbf16, #tpu.memory_space<vmem>>, vector<768x128xbf16>
    %cst_9 = arith.constant dense<0.000000e+00> : vector<2x128xf32>
    %10 = tpu.matmul %8, %9, %cst_9 {dimension_numbers = #tpu.dot_dimension_numbers<[1], [0], [0], [1], [0, 0, 1, 1], [], []>} : vector<2x768xbf16>, vector<768x128xbf16>, vector<2x128xf32> -> vector<2x128xf32>
    %c0_10 = arith.constant 0 : index
    %c0_11 = arith.constant 0 : index
    %11 = vector.load %arg6[%c0_10, %c0_11] : memref<1x128xf32, #tpu.memory_space<vmem>>, vector<1x128xf32>
    %12 = vector.broadcast %11 : vector<1x128xf32> to vector<2x128xf32>
    %13 = arith.addf %10, %12 : vector<2x128xf32>
    %c0_12 = arith.constant 0 : index
    %c0_13 = arith.constant 0 : index
    %14 = vector.load %arg11[%c0_12, %c0_13] : memref<2x128xf32, #tpu.memory_space<vmem>>, vector<2x128xf32>
    tpu.vector_store %arg11[%c0_12, %c0_13], %6 {strides = array<i32>} : memref<2x128xf32, #tpu.memory_space<vmem>>, vector<2x128xf32>,
    %c0_14 = arith.constant 0 : index
    %c0_15 = arith.constant 0 : index
    %15 = vector.load %arg12[%c0_14, %c0_15] : memref<2x128xf32, #tpu.memory_space<vmem>>, vector<2x128xf32>
    tpu.vector_store %arg12[%c0_14, %c0_15], %13 {strides = array<i32>} : memref<2x128xf32, #tpu.memory_space<vmem>>, vector<2x128xf32>,
    %16 = arith.truncf %6 : vector<2x128xf32> to vector<2x128xbf16>
    %c0_16 = arith.constant 0 : index
    %c0_17 = arith.constant 0 : index
    %17 = vector.load %arg7[%c0_16, %c0_17] : memref<128x128xbf16, #tpu.memory_space<vmem>>, vector<128x128xbf16>
    %cst_18 = arith.constant dense<0.000000e+00> : vector<2x128xf32>
    %18 = tpu.matmul %16, %17, %cst_18 {dimension_numbers = #tpu.dot_dimension_numbers<[1], [0], [0], [1], [0, 0, 1, 1], [], []>} : vector<2x128xbf16>, vector<128x128xbf16>, vector<2x128xf32> -> vector<2x128xf32>
    %19 = arith.truncf %13 : vector<2x128xf32> to vector<2x128xbf16>
    %c0_19 = arith.constant 0 : index
    %c0_20 = arith.constant 0 : index
    %20 = vector.load %arg8[%c0_19, %c0_20] : memref<128x128xbf16, #tpu.memory_space<vmem>>, vector<128x128xbf16>
    %cst_21 = arith.constant dense<0.000000e+00> : vector<2x128xf32>
    %21 = tpu.matmul %19, %20, %cst_21 {dimension_numbers = #tpu.dot_dimension_numbers<[1], [0], [0], [1], [0, 0, 1, 1], [], []>} : vector<2x128xbf16>, vector<128x128xbf16>, vector<2x128xf32> -> vector<2x128xf32>
    %22 = arith.addf %18, %21 : vector<2x128xf32>
    %c0_22 = arith.constant 0 : index
    %c0_23 = arith.constant 0 : index
    %23 = vector.load %arg9[%c0_22, %c0_23] : memref<1x128xf32, #tpu.memory_space<vmem>>, vector<1x128xf32>
    %24 = vector.broadcast %23 : vector<1x128xf32> to vector<2x128xf32>
    %25 = arith.addf %22, %24 : vector<2x128xf32>
    %26 = tpu.iota {dimensions = array<i32: 1>} : vector<2x128xi32>
    %c10_i32 = arith.constant 10 : i32
    %27 = vector.broadcast %c10_i32 : i32 to vector<2x128xi32>
    %28 = arith.cmpi slt, %26, %27 : vector<2x128xi32>
    %cst_24 = arith.constant 0xFF800000 : f32
    %29 = vector.broadcast %cst_24 : f32 to vector<2x128xf32>
    %30 = arith.select %28, %25, %29 : vector<2x128xi1>, vector<2x128xf32>
    %cst_25 = arith.constant dense<0xFF800000> : vector<2xf32>
    %31 = vector.multi_reduction <maximumf>, %30, %cst_25 [1] : vector<2x128xf32> to vector<2xf32>
    %32 = vector.shape_cast %31 : vector<2xf32> to vector<2x1xf32>
    %33 = vector.broadcast %32 : vector<2x1xf32> to vector<2x128xf32>
    %34 = arith.subf %30, %33 : vector<2x128xf32>
    %35 = math.exp %34 : vector<2x128xf32>
    %cst_26 = arith.constant dense<0.000000e+00> : vector<2xf32>
    %36 = vector.multi_reduction <add>, %35, %cst_26 [1] : vector<2x128xf32> to vector<2xf32>
    %37 = vector.shape_cast %36 : vector<2xf32> to vector<2x1xf32>
    %38 = tpu.reciprocal %37 {approx = true} : vector<2x1xf32> -> vector<2x1xf32>
    %39 = vector.broadcast %38 : vector<2x1xf32> to vector<2x128xf32>
    %40 = arith.mulf %35, %39 : vector<2x128xf32>
    %c0_27 = arith.constant 0 : index
    %c0_28 = arith.constant 0 : index
    %41 = vector.load %arg10[%c0_27, %c0_28] : memref<2x128xf32, #tpu.memory_space<vmem>>, vector<2x128xf32>
    tpu.vector_store %arg10[%c0_27, %c0_28], %40 {strides = array<i32>} : memref<2x128xf32, #tpu.memory_space<vmem>>, vector<2x128xf32>,
    return
  }
  func.func @transform_0(%arg0: i32) -> (i32, i32) {
    %c0_i32 = arith.constant 0 : i32
    %c0_i32_0 = arith.constant 0 : i32
    return %arg0, %c0_i32 : i32, i32
  }
  func.func @transform_1(%arg0: i32) -> (i32, i32) {
    %c0_i32 = arith.constant 0 : i32
    %c0_i32_0 = arith.constant 0 : i32
    return %arg0, %c0_i32 : i32, i32
  }
  func.func @transform_2(%arg0: i32) -> (i32, i32) {
    %c0_i32 = arith.constant 0 : i32
    %c0_i32_0 = arith.constant 0 : i32
    %c0_i32_1 = arith.constant 0 : i32
    return %c0_i32, %c0_i32_0 : i32, i32
  }
  func.func @transform_3(%arg0: i32) -> (i32, i32) {
    %c0_i32 = arith.constant 0 : i32
    %c0_i32_0 = arith.constant 0 : i32
    %c0_i32_1 = arith.constant 0 : i32
    return %c0_i32, %c0_i32_0 : i32, i32
  }
  func.func @transform_4(%arg0: i32) -> (i32, i32) {
    %c0_i32 = arith.constant 0 : i32
    %c0_i32_0 = arith.constant 0 : i32
    %c0_i32_1 = arith.constant 0 : i32
    return %c0_i32, %c0_i32_0 : i32, i32
  }
  func.func @transform_5(%arg0: i32) -> (i32, i32) {
    %c0_i32 = arith.constant 0 : i32
    %c0_i32_0 = arith.constant 0 : i32
    %c0_i32_1 = arith.constant 0 : i32
    return %c0_i32, %c0_i32_0 : i32, i32
  }
  func.func @transform_6(%arg0: i32) -> (i32, i32) {
    %c0_i32 = arith.constant 0 : i32
    %c0_i32_0 = arith.constant 0 : i32
    %c0_i32_1 = arith.constant 0 : i32
    return %c0_i32, %c0_i32_0 : i32, i32
  }
  func.func @transform_7(%arg0: i32) -> (i32, i32) {
    %c0_i32 = arith.constant 0 : i32
    %c0_i32_0 = arith.constant 0 : i32
    %c0_i32_1 = arith.constant 0 : i32
    return %c0_i32, %c0_i32_0 : i32, i32
  }
  func.func @transform_8(%arg0: i32) -> (i32, i32) {
    %c0_i32 = arith.constant 0 : i32
    %c0_i32_0 = arith.constant 0 : i32
    %c0_i32_1 = arith.constant 0 : i32
    return %c0_i32, %c0_i32_0 : i32, i32
  }
  func.func @transform_9(%arg0: i32) -> (i32, i32) {
    %c0_i32 = arith.constant 0 : i32
    %c0_i32_0 = arith.constant 0 : i32
    return %arg0, %c0_i32 : i32, i32
  }
  func.func @transform_10(%arg0: i32) -> (i32, i32) {
    %c0_i32 = arith.constant 0 : i32
    %c0_i32_0 = arith.constant 0 : i32
    return %arg0, %c0_i32 : i32, i32
  }
  func.func @transform_11(%arg0: i32) -> (i32, i32) {
    %c0_i32 = arith.constant 0 : i32
    %c0_i32_0 = arith.constant 0 : i32
    return %arg0, %c0_i32 : i32, i32
  }
}

</mosaic_0001>

<bundles_post_ra>
// kernel: tpu_custom_call.1
= control target key start
LH: loop header
LB: loop body
LE: loop exit
PB: predicated region body
PF: predicated region fallthrough
CT: control target
= control target key end

     0   :  { %17 = vsyncpa [#allocation3], 0  ;;  %s1777_s0 = inlined_call_operand.hbm [shape: f32[2,64], index: 0, kind: input, shape index: {}]   ;;  %s1778_s1 = inlined_call_operand.hbm [shape: f32[2,768], index: 1, kind: input, shape index: {}]   ;;  %s1779_s2 = inlined_call_operand.hbm [shape: bf16[64,128], index: 2, kind: input, shape index: {}]   ;;  %s1780_s3 = inlined_call_operand.vmem [shape: f32[1,128], index: 3, kind: input, shape index: {}]   ;;  %s1781_s4 = inlined_call_operand.hbm [shape: bf16[768,128], index: 4, kind: input, shape index: {}]   ;;  %s1782_s5 = inlined_call_operand.vmem [shape: f32[1,128], index: 5, kind: input, shape index: {}]   ;;  %s1783_s6 = inlined_call_operand.hbm [shape: bf16[128,128], index: 6, kind: input, shape index: {}]   ;;  %s1784_s7 = inlined_call_operand.hbm [shape: bf16[128,128], index: 7, kind: input, shape index: {}]   ;;  %s1785_s8 = inlined_call_operand.vmem [shape: f32[1,128], index: 8, kind: input, shape index: {}]   ;;  %s1786_s9 = inlined_call_operand.hbm [shape: f32[2,128], index: 9, kind: output, shape index: {0}]   ;;  %s1787_s10 = inlined_call_operand.hbm [shape: f32[2,128], index: 10, kind: output, shape index: {1}]   ;;  %s1788_s11 = inlined_call_operand.hbm [shape: f32[2,128], index: 11, kind: output, shape index: {2}]  }
   0x1   :  { %18 = vsyncpa [#allocation6], 0 }
   0x2   :  { %19 = vsyncpa [#allocation9], 0 }
   0x3   :  { %20 = vsyncpa [#allocation12], 0 }
   0x4   :  { %21 = vsyncpa [#allocation4], 0 }
   0x5   :  { %22 = vsyncpa [#allocation15], 0  ;;  %s1546_s17 = smov [#allocation5]   ;;  %s1336_s21 = scalar_lea.hbm %s1778_s1, 192 }
   0x6   :  { %s39_s18 = sshll.u32 %s1546_s17, 4  ;;  %p1337_p0 = scmp.ne.s32.totalorder %s1778_s1, %s1336_s21  ;;  %s40_s18 = int_to_ptr.vmem [resolvable:$true] %s39_s18 }
   0x7   :  { %p1340_p1 = scmp.lt.u32.totalorder %s1336_s21, %s1778_s1 }
   0x9   :  { %p1342_p2 = pnand %p1340_p1, %p1337_p0 }
   0xb   :  { %1345 = shalt.err (!%p1342_p2)
}
   0xc   :  { %s1346_s26 = scalar_lea.vmem %s40_s18, 192  ;;  %p1351_p4 = scmp.lt.s32.totalorder %s40_s18, %s40_s18 }
   0xd   :  { %p1347_p3 = scmp.ne.s32.totalorder %s40_s18, %s1346_s26  ;;  %p1352_p5 = scmp.lt.s32.totalorder %s1346_s26, %s1346_s26 }
   0xf   :  { %p1353_p6 = por %p1352_p5, %p1351_p4 }
  0x11   :  { %p1354_p7 = pnand %p1353_p6, %p1347_p3 }
  0x13   :  { %1357 = shalt.err (!%p1354_p7)
}
  0x14   :  { %42 = dma.hbm_to_vmem [thread:$0]  %s1778_s1, 192, %s40_s18, [#allocation6]  }
  0x15   :  { %s1547_s29 = smov [#allocation8]   ;;  %s1548_s12 = smov [#allocation2]  }
  0x16   :  { %s62_s30 = sshll.u32 %s1547_s29, 4  ;;  %s29_s13 = sshll.u32 %s1548_s12, 4  ;;  %s63_s30 = int_to_ptr.vmem [resolvable:$true] %s62_s30  ;;  %s30_s13 = int_to_ptr.vmem [resolvable:$true] %s29_s13 }
  0x17   :  { %s1358_s16 = scalar_lea.hbm %s1781_s4, 6144 }
  0x18   :  { %p1359_p8 = scmp.ne.s32.totalorder %s1781_s4, %s1358_s16  ;;  %p1362_p9 = scmp.lt.u32.totalorder %s1358_s16, %s1781_s4 }
  0x1a   :  { %p1364_p10 = pnand %p1362_p9, %p1359_p8 }
  0x1c   :  { %1367 = shalt.err (!%p1364_p10)
}
  0x1d   :  { %s1368_s1 = scalar_lea.vmem %s63_s30, 6144  ;;  %p1373_p12 = scmp.lt.s32.totalorder %s63_s30, %s63_s30 }
  0x1e   :  { %p1369_p11 = scmp.ne.s32.totalorder %s63_s30, %s1368_s1  ;;  %p1374_p13 = scmp.lt.s32.totalorder %s1368_s1, %s1368_s1 }
  0x20   :  { %p1375_p0 = por %p1374_p13, %p1373_p12 }
  0x22   :  { %p1376_p1 = pnand %p1375_p0, %p1369_p11 }
  0x24   :  { %1379 = shalt.err (!%p1376_p1)
}
  0x25   :  { %s1549_s18 = smov 64   ;;  %s1550_s22 = smov 4  }
  0x26   :  { %68 = dma.hbm_to_vmem [thread:$0]  %s1781_s4, 6144, %s63_s30, [#allocation9], %s1549_s18, %s1549_s18, %s1550_s22  }
  0x27   :  { %s1380_s27 = scalar_lea.hbm %s1777_s0, 32 }
  0x28   :  { %p1381_p2 = scmp.ne.s32.totalorder %s1777_s0, %s1380_s27  ;;  %p1384_p3 = scmp.lt.u32.totalorder %s1380_s27, %s1777_s0 }
  0x2a   :  { %p1386_p4 = pnand %p1384_p3, %p1381_p2 }
  0x2c   :  { %1389 = shalt.err (!%p1386_p4)
}
  0x2d   :  { %s1390_s15 = scalar_lea.vmem %s30_s13, 32  ;;  %p1395_p6 = scmp.lt.s32.totalorder %s30_s13, %s30_s13 }
  0x2e   :  { %p1391_p5 = scmp.ne.s32.totalorder %s30_s13, %s1390_s15  ;;  %p1396_p7 = scmp.lt.s32.totalorder %s1390_s15, %s1390_s15 }
  0x30   :  { %p1397_p8 = por %p1396_p7, %p1395_p6 }
  0x32   :  { %p1398_p9 = pnand %p1397_p8, %p1391_p5 }
  0x34   :  { %1401 = shalt.err (!%p1398_p9)
}
  0x35   :  { %32 = dma.hbm_to_vmem [thread:$0]  %s1777_s0, 32, %s30_s13, [#allocation3]  }
  0x36   :  { %s1551_s16 = smov [#allocation7]   ;;  %s1552_s19 = smov [#allocation10]  }
  0x37   :  { %s48_s17 = sshll.u32 %s1551_s16, 4  ;;  %s76_s20 = sshll.u32 %s1552_s19, 4  ;;  %s49_s17 = int_to_ptr.vmem [resolvable:$true] %s48_s17  ;;  %s77_s20 = int_to_ptr.vmem [resolvable:$true] %s76_s20 }
  0x38   :  { %s1402_s23 = scalar_lea.hbm %s1779_s2, 512 }
  0x39   :  { %p1403_p10 = scmp.ne.s32.totalorder %s1779_s2, %s1402_s23  ;;  %p1406_p11 = scmp.lt.u32.totalorder %s1402_s23, %s1779_s2 }
  0x3b   :  { %p1408_p12 = pnand %p1406_p11, %p1403_p10 }
  0x3d   :  { %1411 = shalt.err (!%p1408_p12)
}
  0x3e   :  { %s1412_s0 = scalar_lea.vmem %s49_s17, 512  ;;  %p1417_p0 = scmp.lt.s32.totalorder %s49_s17, %s49_s17 }
  0x3f   :  { %p1413_p13 = scmp.ne.s32.totalorder %s49_s17, %s1412_s0  ;;  %p1418_p1 = scmp.lt.s32.totalorder %s1412_s0, %s1412_s0 }
  0x41   :  { %p1419_p2 = por %p1418_p1, %p1417_p0 }
  0x43   :  { %p1420_p3 = pnand %p1419_p2, %p1413_p13 }
  0x45   :  { %1423 = shalt.err (!%p1420_p3)
}
  0x46   :  { %54 = dma.hbm_to_vmem [thread:$0]  %s1779_s2, 512, %s49_s17, [#allocation6], %s1549_s18, %s1549_s18, %s1550_s22  }
  0x47   :  { %s1424_s14 = scalar_lea.hbm %s1783_s6, 1024 }
  0x48   :  { %p1425_p4 = scmp.ne.s32.totalorder %s1783_s6, %s1424_s14  ;;  %p1428_p5 = scmp.lt.u32.totalorder %s1424_s14, %s1783_s6 }
  0x4a   :  { %p1430_p6 = pnand %p1428_p5, %p1425_p4 }
  0x4c   :  { %1433 = shalt.err (!%p1430_p6)
}
  0x4d   :  { %s1434_s19 = scalar_lea.vmem %s77_s20, 1024  ;;  %p1439_p8 = scmp.lt.s32.totalorder %s77_s20, %s77_s20 }
  0x4e   :  { %p1435_p7 = scmp.ne.s32.totalorder %s77_s20, %s1434_s19  ;;  %p1440_p9 = scmp.lt.s32.totalorder %s1434_s19, %s1434_s19 }
  0x50   :  { %p1441_p10 = por %p1440_p9, %p1439_p8 }
  0x52   :  { %p1442_p11 = pnand %p1441_p10, %p1435_p7 }
  0x54   :  { %1445 = shalt.err (!%p1442_p11)
}
  0x55   :  { %82 = dma.hbm_to_vmem [thread:$0]  %s1783_s6, 1024, %s77_s20, [#allocation9], %s1549_s18, %s1549_s18, %s1550_s22  }
  0x56   :  { %s1553_s21 = smov [#allocation11]   ;;  %s1446_s25 = scalar_lea.hbm %s1784_s7, 1024 }
  0x57   :  { %s88_s1 = sshll.u32 %s1553_s21, 4  ;;  %p1447_p12 = scmp.ne.s32.totalorder %s1784_s7, %s1446_s25  ;;  %s89_s1 = int_to_ptr.vmem [resolvable:$true] %s88_s1 }
  0x58   :  { %p1450_p13 = scmp.lt.u32.totalorder %s1446_s25, %s1784_s7 }
  0x5a   :  { %p1452_p0 = pnand %p1450_p13, %p1447_p12 }
  0x5c   :  { %1455 = shalt.err (!%p1452_p0)
}
  0x5d   :  { %s1456_s28 = scalar_lea.vmem %s89_s1, 1024  ;;  %p1461_p2 = scmp.lt.s32.totalorder %s89_s1, %s89_s1 }
  0x5e   :  { %p1457_p1 = scmp.ne.s32.totalorder %s89_s1, %s1456_s28  ;;  %p1462_p3 = scmp.lt.s32.totalorder %s1456_s28, %s1456_s28 }
  0x60   :  { %p1463_p4 = por %p1462_p3, %p1461_p2 }
  0x62   :  { %p1464_p5 = pnand %p1463_p4, %p1457_p1 }
  0x64   :  { %1467 = shalt.err (!%p1464_p5)
}
  0x65   :  { %94 = dma.hbm_to_vmem [thread:$0]  %s1784_s7, 1024, %s89_s1, [#allocation12], %s1549_s18, %s1549_s18, %s1550_s22  }
  0x66   :  { %1534 = dma.done.wait [#allocation3], 32  }
  0x67   :  { %1535 = vsyncadd [#allocation3], 4294967264 }
  0x68   :  { %1536 = dma.done.wait [#allocation6], 704  }
  0x69   :  { %1537 = vsyncadd [#allocation6], 4294966592 }
  0x6a   :  { %1538 = dma.done.wait [#allocation9], 7168  }
  0x6b   :  { %1539 = vsyncadd [#allocation9], 4294960128 }
  0x6c   :  { %1540 = dma.done.wait [#allocation12], 1024  }
  0x6d   :  { %1541 = vsyncadd [#allocation12], 4294966272  ;;  %v1554_v0 = vmov 0.0   ;;  %vm1555_vm0 = vmmov 0   ;;  %v1263_v1 = vld [vmem:[#allocation7] sm:$0xff]   ;;  %v1266_v4 = vld [vmem:[#allocation7 + $0x8] sm:$0xff]   ;;  %v209_v22 = vlaneseq }
  0x6e   :  { %1197 = vmatprep.subr.bf16.mxu0 %v1554_v0  ;;  %1205 = vmatprep.mubr.msk.bf16.mxu0 %vm1555_vm0, %v1554_v0  ;;  %v1264_v2 = vld [vmem:[#allocation8 + $0x40] sm:$0xff]   ;;  %v1267_v5 = vld [vmem:[#allocation8 + $0x48] sm:$0xff]   ;;  %v1269_v7 = vld [vmem:[#allocation7 + $0x10] sm:$0xff]   ;;  %vm157_vm1 = vcmask 523264   ;;  %v1556_v20 = vmov 1983009808  }
  0x6f   :  { %1198 = vmatpush3.bf16.msra.mxu0 %v1263_v1  ;;  %v1265_v3 = vld [vmem:[#allocation8] sm:$0xff]   ;;  %1113 = vmatprep.subr.bf16.mxu1 %v1264_v2  ;;  %v1268_v6 = vld [vmem:[#allocation8 + $0x8] sm:$0xff]   ;;  %v1270_v8 = vld [vmem:[#allocation8 + $0x50] sm:$0xff]   ;;  %v207_v21 = vunpack.c.l.s4 %v1556_v20  ;;  %v210_v28 = vshrl.u32 %v209_v22, 7  ;;  %vm977_vm3 = vcmask 1041408   ;;  %s1557_s12 = smov [#allocation14]  }
  0x70   :  { %1199 = vmatprep.subr.bf16.mxu0 %v1554_v0  ;;  %1114 = vmatpush3.bf16.msra.mxu1 %v1265_v3  ;;  %v1271_v9 = vld [vmem:[#allocation8 + $0x10] sm:$0xff]   ;;  %v1272_v10 = vld [vmem:[#allocation7 + $0x18] sm:$0xff]   ;;  %v1275_v13 = vld [vmem:[#allocation8 + $0xc0] sm:$0xff]   ;;  %s1006_s14 = sshll.u32 %s1557_s12, 4  ;;  %s1007_s14 = int_to_ptr.vmem [resolvable:$true] %s1006_s14 }
  0x71   :  { %1115 = vmatprep.subr.bf16.mxu1 %v1267_v5  ;;  %v1273_v11 = vld [vmem:[#allocation8 + $0x58] sm:$0xff]   ;;  %v116_v14 = vld [vmem:[#allocation2] sm:$0x3]  ;;  %v1276_v16 = vld [vmem:[#allocation8 + $0x60] sm:$0xff]   ;;  %v208_v27 = vunpack.c.0.s8 %v207_v21  ;;  %p1473_p7 = scmp.lt.s32.totalorder %s1007_s14, %s1007_s14 }
  0x72   :  { %v1274_v12 = vld [vmem:[#allocation8 + $0x18] sm:$0xff]   ;;  %v117_v15 = vpack.c.bf16 %v116_v14, %v116_v14  ;;  %v1277_v17 = vld [vmem:[#allocation8 + $0x80] sm:$0xff]   ;;  %v1279_v19 = vld [vmem:[#allocation8 + $0xc8] sm:$0xff]  }
  0x73   :  { %1200 = vmatpush3.bf16.msra.mxu0 %v1266_v4  ;;  %v1278_v18 = vld [vmem:[#allocation8 + $0x20] sm:$0xff]   ;;  %v1280_v23 = vld [vmem:[#allocation8 + $0x68] sm:$0xff]   ;;  %v1283_v26 = vld [vmem:[#allocation8 + $0xd0] sm:$0xff]   ;;  %v211_v33 = vsub.s32 %v208_v27, %v210_v28 }
  0x74   :  { %1201 = vmatprep.subr.bf16.mxu0 %v1554_v0  ;;  %1116 = vmatpush3.bf16.msra.mxu1 %v1268_v6  ;;  %v1281_v24 = vld [vmem:[#allocation8 + $0x88] sm:$0xff]   ;;  %v1284_v29 = vld [vmem:[#allocation8 + $0x70] sm:$0xff]   ;;  %v1287_v32 = vld [vmem:[#allocation8 + $0xd8] sm:$0xff]  }
  0x75   :  { %1117 = vmatprep.subr.bf16.mxu1 %v1270_v8  ;;  %v1282_v25 = vld [vmem:[#allocation8 + $0x28] sm:$0xff]   ;;  %v1285_v30 = vld [vmem:[#allocation8 + $0x90] sm:$0xff]   ;;  %v1288_v34 = vld [vmem:[#allocation8 + $0x78] sm:$0xff]  }
  0x76   :  { %v1286_v31 = vld [vmem:[#allocation8 + $0x30] sm:$0xff]   ;;  %v1289_v35 = vld [vmem:[#allocation8 + $0x98] sm:$0xff]   ;;  %v1292_v40 = vld [vmem:[#allocation8 + $0xe0] sm:$0xff]  }
  0x77   :  { %1202 = vmatpush3.bf16.msra.mxu0 %v1269_v7  ;;  %v1290_v36 = vld [vmem:[#allocation8 + $0x38] sm:$0xff]   ;;  %v1293_v41 = vld [vmem:[#allocation8 + $0xa0] sm:$0xff]   ;;  %v1296_v48 = vld [vmem:[#allocation8 + $0xe8] sm:$0xff]  }
  0x78   :  { %1203 = vmatprep.subr.bf16.mxu0 %v1554_v0  ;;  %1118 = vmatpush3.bf16.msra.mxu1 %v1271_v9  ;;  %v201_v37 = vld [vmem:[#allocation5] sm:$0xff]  ;;  %v1294_v43 = vld [vmem:[#allocation8 + $0x140] sm:$0xff]   ;;  %v1297_v50 = vld [vmem:[#allocation8 + $0xa8] sm:$0xff]  }
  0x79   :  { %1119 = vmatprep.subr.bf16.mxu1 %v1273_v11  ;;  %v205_v38 = vcombine.high %v201_v37, %v201_v37  ;;  %v212_v39 = vrot.slane %v201_v37, %v211_v33  ;;  %v1295_v46 = vld [vmem:[#allocation8 + $0x100] sm:$0xff]   ;;  %v1298_v51 = vld [vmem:[#allocation8 + $0x148] sm:$0xff]   ;;  %v1300_v54 = vld [vmem:[#allocation8 + $0xf0] sm:$0xff]  }
  0x7a   :  { %v1299_v53 = vld [vmem:[#allocation8 + $0x108] sm:$0xff]   ;;  %v1301_v55 = vld [vmem:[#allocation8 + $0xb0] sm:$0xff]   ;;  %v1304_v58 = vld [vmem:[#allocation8 + $0xf8] sm:$0xff]  }
  0x7b   :  { %1204 = vmatpush3.bf16.msra.mxu0 %v1272_v10  ;;  %v220_v42 = vcombine.high %v212_v39, %v212_v39  ;;  %v219_v44 = vrot.slane %v205_v38, %v211_v33  ;;  %v236_v45 = vpack.c.bf16 %v212_v39, %v212_v39  ;;  %v1302_v56 = vld [vmem:[#allocation8 + $0x150] sm:$0xff]   ;;  %v1305_v59 = vld [vmem:[#allocation8 + $0xb8] sm:$0xff]   ;;  %v1308_v63 = vld [vmem:[#allocation8 + $0x160] sm:$0xff]  }
  0x7c   :  { %1135 = vmatprep.subr.bf16.mxu0 %v1275_v13  ;;  %1120 = vmatpush3.bf16.msra.mxu1 %v1274_v12  ;;  %v1303_v57 = vld [vmem:[#allocation8 + $0x110] sm:$0xff]   ;;  %v1306_v60 = vld [vmem:[#allocation8 + $0x158] sm:$0xff]   ;;  %v1309_v1 = vld [vmem:[#allocation8 + $0x120] sm:$0xff]  }
  0x7d   :  { %1121 = vmatprep.subr.bf16.mxu1 %v1276_v16  ;;  %v237_v47 = vpack.c.bf16 %v220_v42, %v220_v42  ;;  %v221_v49 = vcombine.high %v219_v44, %v219_v44  ;;  %v1307_v61 = vld [vmem:[#allocation8 + $0x118] sm:$0xff]   ;;  %v238_v62 = vpack.c.bf16 %v219_v44, %v219_v44  ;;  %v1310_v2 = vld [vmem:[#allocation8 + $0x168] sm:$0xff]   ;;  %v1312_v5 = vld [vmem:[#allocation8 + $0x170] sm:$0xff]  }
  0x7e   :  { %1206 = vmatmul.mubr.msk.bf16.vlgmr.msra.gmra.mrb[0].mxu0 %vm157_vm1, %v117_v15  ;;  %v1311_v3 = vld [vmem:[#allocation8 + $0x128] sm:$0xff]   ;;  %v1041_v4 = vld.sshfl [vmem:[#allocation5 + $0x8] sm:$0x33 pattern:$0x76325410]  ;;  %v1313_v8 = vld [vmem:[#allocation8 + $0x130] sm:$0xff]  }
  0x7f   :  { %1136 = vmatpush3.bf16.msra.mxu0 %v1277_v17  ;;  %665 = vmatprep.mubr.bf16.mxu1 %v237_v47  ;;  %v239_v52 = vpack.c.bf16 %v221_v49, %v221_v49  ;;  %v229_v6 = vcombine.high %v1041_v4, %v1041_v4  ;;  %v1314_v9 = vld [vmem:[#allocation8 + $0x178] sm:$0xff]   ;;  %v1316_v11 = vld [vmem:[#allocation10] sm:$0xff]   ;;  %v240_v12 = vpack.c.bf16 %v1041_v4, %v1041_v4  ;;  %v1317_v13 = vld [vmem:[#allocation10 + $0x8] sm:$0xff]  }
  0x80   :  { %1137 = vmatprep.subr.bf16.mxu0 %v1279_v19  ;;  %1122 = vmatpush3.bf16.msra.mxu1 %v1278_v18  ;;  %v1315_v10 = vld [vmem:[#allocation8 + $0x138] sm:$0xff]   ;;  %v1318_v14 = vld [vmem:[#allocation10 + $0x10] sm:$0xff]   ;;  %v1320_v16 = vld [vmem:[#allocation10 + $0x20] sm:$0xff]  }
  0x81   :  { %1123 = vmatprep.subr.bf16.mxu1 %v1280_v23  ;;  %705 = vmatprep.mubr.bf16.mxu0 %v239_v52  ;;  %v241_v7 = vpack.c.bf16 %v229_v6, %v229_v6  ;;  %v1319_v15 = vld [vmem:[#allocation10 + $0x18] sm:$0xff]   ;;  %v1321_v17 = vld [vmem:[#allocation10 + $0x28] sm:$0xff]   ;;  %v1322_v18 = vld [vmem:[#allocation10 + $0x30] sm:$0xff]  }
  0x82   :  { %v1323_v19 = vld [vmem:[#allocation10 + $0x38] sm:$0xff]   ;;  %v1324_v20 = vld [vmem:[#allocation11] sm:$0xff]   ;;  %v1325_v21 = vld [vmem:[#allocation11 + $0x8] sm:$0xff]  }
  0x83   :  { %1138 = vmatpush3.bf16.msra.mxu0 %v1281_v24  ;;  %v1326_v23 = vld [vmem:[#allocation11 + $0x10] sm:$0xff]   ;;  %v1327_v24 = vld [vmem:[#allocation11 + $0x18] sm:$0xff]  }
  0x84   :  { %1139 = vmatprep.subr.bf16.mxu0 %v1283_v26  ;;  %1124 = vmatpush3.bf16.msra.mxu1 %v1282_v25  ;;  %v1328_v25 = vld [vmem:[#allocation11 + $0x20] sm:$0xff]   ;;  %v1329_v26 = vld [vmem:[#allocation11 + $0x28] sm:$0xff]   ;;  %v1330_v27 = vld [vmem:[#allocation11 + $0x30] sm:$0xff]  }
  0x85   :  { %1125 = vmatprep.subr.bf16.mxu1 %v1284_v29  ;;  %v1331_v28 = vld [vmem:[#allocation11 + $0x38] sm:$0xff]   ;;  %v1035_v29 = vld [vmem:[%s1780_s3] ss:$0 sm:$0xff] }
  0x87   :  { %1140 = vmatpush3.bf16.msra.mxu0 %v1285_v30 }
  0x88   :  { %1141 = vmatprep.subr.bf16.mxu0 %v1287_v32  ;;  %1126 = vmatpush3.bf16.msra.mxu1 %v1286_v31 }
  0x89   :  { %1127 = vmatprep.subr.bf16.mxu1 %v1288_v34 }
  0x8b   :  { %1142 = vmatpush3.bf16.msra.mxu0 %v1289_v35 }
  0x8c   :  { %1143 = vmatprep.subr.bf16.mxu0 %v1292_v40  ;;  %1128 = vmatpush3.bf16.msra.mxu1 %v1290_v36 }
  0x8d   :  { %1157 = vmatprep.subr.bf16.mxu1 %v1294_v43 }
  0x8f   :  { %1144 = vmatpush3.bf16.msra.mxu0 %v1293_v41  ;;  %666 = vmatmul.mubr.bf16.vlgmr.msra.gmra.mrb[0].mxu1 %v236_v45 }
  0x90   :  { %1145 = vmatprep.subr.bf16.mxu0 %v1296_v48  ;;  %1158 = vmatpush3.bf16.msra.mxu1 %v1295_v46 }
  0x91   :  { %1159 = vmatprep.subr.bf16.mxu1 %v1298_v51  ;;  %745 = vmatprep.mubr.bf16.mxu1 %v241_v7 }
  0x93   :  { %1146 = vmatpush3.bf16.msra.mxu0 %v1297_v50 }
  0x94   :  { %1147 = vmatprep.subr.bf16.mxu0 %v1300_v54  ;;  %1160 = vmatpush3.bf16.msra.mxu1 %v1299_v53 }
  0x95   :  { %1161 = vmatprep.subr.bf16.mxu1 %v1302_v56 }
  0x97   :  { %1148 = vmatpush3.bf16.msra.mxu0 %v1301_v55 }
  0x98   :  { %1149 = vmatprep.subr.bf16.mxu0 %v1304_v58  ;;  %1162 = vmatpush3.bf16.msra.mxu1 %v1303_v57 }
  0x99   :  { %1163 = vmatprep.subr.bf16.mxu1 %v1306_v60 }
  0x9b   :  { %1150 = vmatpush3.bf16.msra.mxu0 %v1305_v59  ;;  %v974_v59 = vand.u32 127, %v209_v22 }
  0x9c   :  { %1209 = vmatprep.subr.bf16.mxu0 %v1554_v0  ;;  %1164 = vmatpush3.bf16.msra.mxu1 %v1307_v61  ;;  %v1107_v61 = vld [vmem:[%s1785_s8] ss:$0 sm:$0xff]  ;;  %s1468_s8 = scalar_lea.vmem %s1007_s14, 32 }
  0x9d   :  { %1165 = vmatprep.subr.bf16.mxu1 %v1308_v63  ;;  %vm975_vm2 = vcmp.lt.s32.totalorder %v974_v59, 10  ;;  %p1469_p6 = scmp.ne.s32.totalorder %s1007_s14, %s1468_s8  ;;  %p1474_p8 = scmp.lt.s32.totalorder %s1468_s8, %s1468_s8 }
  0x9e   :  { %706 = vmatmul.mubr.bf16.vlgmr.msra.gmra.mrb[4].mxu0 %v238_v62 }
  0x9f   :  { %1225 = vmatprep.mubr.msk.bf16.mxu0 %vm1555_vm0, %v1554_v0  ;;  %1210 = vmatpush3.bf16.msra.mxu0 %v1324_v20  ;;  %p1475_p9 = por %p1474_p8, %p1473_p7 }
  0xa0   :  { %1166 = vmatpush3.bf16.msra.mxu1 %v1309_v1  ;;  %1211 = vmatprep.subr.bf16.mxu0 %v1554_v0 }
  0xa1   :  { %1167 = vmatprep.subr.bf16.mxu1 %v1310_v2  ;;  %p1476_p10 = pnand %p1475_p9, %p1469_p6 }
  0xa3   :  { %1212 = vmatpush3.bf16.msra.mxu0 %v1325_v21 }
  0xa4   :  { %1168 = vmatpush3.bf16.msra.mxu1 %v1311_v3  ;;  %1213 = vmatprep.subr.bf16.mxu0 %v1554_v0 }
  0xa5   :  { %1169 = vmatprep.subr.bf16.mxu1 %v1312_v5 }
  0xa7   :  { %1214 = vmatpush3.bf16.msra.mxu0 %v1326_v23 }
  0xa8   :  { %1170 = vmatpush3.bf16.msra.mxu1 %v1313_v8  ;;  %1215 = vmatprep.subr.bf16.mxu0 %v1554_v0 }
  0xa9   :  { %1171 = vmatprep.subr.bf16.mxu1 %v1314_v9 }
  0xab   :  { %1216 = vmatpush3.bf16.msra.mxu0 %v1327_v24 }
  0xac   :  { %1172 = vmatpush3.bf16.msra.mxu1 %v1315_v10  ;;  %1217 = vmatprep.subr.bf16.mxu0 %v1554_v0 }
  0xad   :  { %1229 = vmatprep.subr.bf16.mxu1 %v1554_v0 }
  0xaf   :  { %746 = vmatmul.mubr.bf16.vlgmr.msra.gmra.mrb[4].mxu1 %v240_v12  ;;  %1218 = vmatpush3.bf16.msra.mxu0 %v1328_v25 }
  0xb0   :  { %1230 = vmatpush3.bf16.msra.mxu1 %v1316_v11  ;;  %1245 = vmatprep.mubr.msk.bf16.mxu1 %vm1555_vm0, %v1554_v0 }
  0xb1   :  { %1231 = vmatprep.subr.bf16.mxu1 %v1554_v0  ;;  %1219 = vmatprep.subr.bf16.mxu0 %v1554_v0 }
  0xb3   :  { %1220 = vmatpush3.bf16.msra.mxu0 %v1329_v26 }
  0xb4   :  { %1232 = vmatpush3.bf16.msra.mxu1 %v1317_v13  ;;  %1221 = vmatprep.subr.bf16.mxu0 %v1554_v0 }
  0xb5   :  { %1233 = vmatprep.subr.bf16.mxu1 %v1554_v0 }
  0xb7   :  { %1222 = vmatpush3.bf16.msra.mxu0 %v1330_v27 }
  0xb8   :  { %1234 = vmatpush3.bf16.msra.mxu1 %v1318_v14  ;;  %1223 = vmatprep.subr.bf16.mxu0 %v1554_v0 }
  0xb9   :  { %1235 = vmatprep.subr.bf16.mxu1 %v1554_v0 }
  0xbb   :  { %1224 = vmatpush3.bf16.msra.mxu0 %v1331_v28 }
  0xbc   :  { %1236 = vmatpush3.bf16.msra.mxu1 %v1319_v15 }
  0xbd   :  { %1237 = vmatprep.subr.bf16.mxu1 %v1554_v0 }
  0xc0   :  { %1238 = vmatpush3.bf16.msra.mxu1 %v1320_v16 }
  0xc1   :  { %1239 = vmatprep.subr.bf16.mxu1 %v1554_v0 }
  0xc4   :  { %1240 = vmatpush3.bf16.msra.mxu1 %v1321_v17 }
  0xc5   :  { %1241 = vmatprep.subr.bf16.mxu1 %v1554_v0 }
  0xc8   :  { %1242 = vmatpush3.bf16.msra.mxu1 %v1322_v18 }
  0xc9   :  { %1243 = vmatprep.subr.bf16.mxu1 %v1554_v0  ;;  %v1042_v0 = vld [vmem:[%s1782_s5] ss:$0 sm:$0xff] }
  0xcc   :  { %1244 = vmatpush3.bf16.msra.mxu1 %v1323_v19 }
 0x151   :  { %v195_v30 = vpop.f32.mrb[0].mxu0 }
 0x152   :  { %v196_v31 = vadd.f32 %v1035_v29, %v195_v30  ;;  %v1207_v32 = vpop.f32.mrb[1].mxu0 }
 0x153   :  { %v198_v33 = vpop.f32.mrb[2].mxu0 }
 0x154   :  { %v755_v34 = vpack.c.bf16 %v196_v31, %v196_v31  ;;  %753 = vst [vmem:[#allocation14] sm:$0x3] %v196_v31  ;;  %v1208_v35 = vpop.f32.mrb[3].mxu0 }
 0x156   :  { %1246 = vmatmul.mubr.bf16.vlgmr.msra.gmra.mrb[8].mxu1 %v755_v34 }
 0x162   :  { %v1129_v36 = vpop.f32.mrb[0].mxu1 }
 0x163   :  { %v1130_v37 = vpop.f32.mrb[1].mxu1 }
 0x164   :  { %v1131_v38 = vadd.f32 %v1130_v37, %v1129_v36  ;;  %v1132_v39 = vpop.f32.mrb[2].mxu1 }
 0x165   :  { %v1133_v40 = vpop.f32.mrb[3].mxu1 }
 0x166   :  { %v668_v43 = vadd.f32 %v1131_v38, %v1042_v0 }
 0x171   :  { %v1151_v41 = vpop.f32.mrb[4].mxu0 }
 0x172   :  { %v1152_v42 = vpop.f32.mrb[5].mxu0 }
 0x173   :  { %v1153_v44 = vadd.f32 %v1152_v42, %v1151_v41  ;;  %v1154_v45 = vpop.f32.mrb[6].mxu0 }
 0x174   :  { %v1155_v46 = vpop.f32.mrb[7].mxu0 }
 0x175   :  { %v708_v47 = vadd.f32 %v1153_v44, %v668_v43 }
 0x182   :  { %v1173_v48 = vpop.f32.mrb[4].mxu1 }
 0x183   :  { %v1174_v49 = vpop.f32.mrb[5].mxu1 }
 0x184   :  { %v1175_v50 = vadd.f32 %v1174_v49, %v1173_v48  ;;  %v1176_v51 = vpop.f32.mrb[6].mxu1 }
 0x185   :  { %v1177_v52 = vpop.f32.mrb[7].mxu1 }
 0x186   :  { %v748_v53 = vadd.f32 %v1175_v50, %v708_v47 }
 0x188   :  { %v772_v54 = vpack.c.bf16 %v748_v53, %v748_v53  ;;  %754 = vst [vmem:[#allocation16] sm:$0x3] %v748_v53 }
 0x18a   :  { %1226 = vmatmul.mubr.bf16.vlgmr.msra.gmra.mrb[8].mxu0 %v772_v54 }
 0x229   :  { %v959_v55 = vpop.f32.mrb[8].mxu1 }
 0x22a   :  { %v1247_v56 = vpop.f32.mrb[9].mxu1 }
 0x22b   :  { %v962_v57 = vpop.f32.mrb[10].mxu1 }
 0x22c   :  { %v1248_v58 = vpop.f32.mrb[11].mxu1 }
 0x25d   :  { %v871_v60 = vpop.f32.mrb[8].mxu0 }
 0x25e   :  { %v960_v62 = vadd.f32 %v959_v55, %v871_v60  ;;  %v1227_v63 = vpop.f32.mrb[9].mxu0 }
 0x25f   :  { %v874_v1 = vpop.f32.mrb[10].mxu0 }
 0x260   :  { %v972_v2 = vadd.f32 %v1107_v61, %v960_v62  ;;  %v1228_v3 = vpop.f32.mrb[11].mxu0 }
 0x262   :  { %v976_v4 = vsel %vm975_vm2, %v972_v2, -inf }
 0x263   :  { %v978_v5 = vsel %vm977_vm3, %v976_v4, -inf }
 0x264   :  { %979 = vmax.xlane.f32.xlu0 %v978_v5 }
 0x2f1   :  { %v980_v6 = vpop.xlane.xlu0 %979 }
 0x2f2   :  { %v981_v7 = vsub.f32 %v976_v4, %v980_v6 }
 0x2f4   :  { %v982_v8 = vmul.f32 1.442695, %v981_v7 }
 0x2f6   :  { %1332 = vpow2.f32 %v982_v8 }
 0x300   :  { %v1333_v22 = vpop.eup %1332 }
 0x301   :  { %v984_v9 = vsel %vm977_vm3, %v1333_v22, 0.0 }
 0x302   :  { %985 = vadd.xlane.f32.xlu0 %v984_v9 }
 0x303   :  { %1479 = shalt.err (!%p1476_p10)
}
 0x304   :  { %s1480_s30 = scalar_lea.hbm %s1787_s10, 32 }
 0x305   :  { %p1481_p11 = scmp.ne.s32.totalorder %s1787_s10, %s1480_s30  ;;  %p1484_p12 = scmp.lt.u32.totalorder %s1480_s30, %s1787_s10 }
 0x307   :  { %p1486_p13 = pnand %p1484_p12, %p1481_p11 }
 0x309   :  { %1489 = shalt.err (!%p1486_p13)
}
 0x30a   :  { %1009 = dma.vmem_to_hbm [thread:$0]  %s1007_s14, 32, %s1787_s10, [#allocation15]  }
 0x30b   :  { %s1558_s23 = smov [#allocation16]  }
 0x30c   :  { %s1016_s24 = sshll.u32 %s1558_s23, 4  ;;  %s1017_s24 = int_to_ptr.vmem [resolvable:$true] %s1016_s24 }
 0x30d   :  { %s1490_s25 = scalar_lea.vmem %s1017_s24, 32  ;;  %p1495_p1 = scmp.lt.s32.totalorder %s1017_s24, %s1017_s24 }
 0x30e   :  { %p1491_p0 = scmp.ne.s32.totalorder %s1017_s24, %s1490_s25  ;;  %p1496_p2 = scmp.lt.s32.totalorder %s1490_s25, %s1490_s25 }
 0x310   :  { %p1497_p3 = por %p1496_p2, %p1495_p1 }
 0x312   :  { %p1498_p4 = pnand %p1497_p3, %p1491_p0 }
 0x314   :  { %1501 = shalt.err (!%p1498_p4)
}
 0x315   :  { %s1502_s0 = scalar_lea.hbm %s1788_s11, 32 }
 0x316   :  { %p1503_p5 = scmp.ne.s32.totalorder %s1788_s11, %s1502_s0  ;;  %p1506_p6 = scmp.lt.u32.totalorder %s1502_s0, %s1788_s11 }
 0x318   :  { %p1508_p7 = pnand %p1506_p6, %p1503_p5 }
 0x31a   :  { %1511 = shalt.err (!%p1508_p7)
}
 0x31b   :  { %1019 = dma.vmem_to_hbm [thread:$0]  %s1017_s24, 32, %s1788_s11, [#allocation15]  }
 0x31c   :  { %s1559_s18 = smov [#allocation13]  }
 0x31d   :  { %s996_s22 = sshll.u32 %s1559_s18, 4  ;;  %s997_s22 = int_to_ptr.vmem [resolvable:$true] %s996_s22 }
 0x31e   :  { %s1512_s29 = scalar_lea.vmem %s997_s22, 32  ;;  %p1517_p9 = scmp.lt.s32.totalorder %s997_s22, %s997_s22 }
 0x31f   :  { %p1513_p8 = scmp.ne.s32.totalorder %s997_s22, %s1512_s29  ;;  %p1518_p10 = scmp.lt.s32.totalorder %s1512_s29, %s1512_s29 }
 0x321   :  { %p1519_p11 = por %p1518_p10, %p1517_p9 }
 0x323   :  { %p1520_p12 = pnand %p1519_p11, %p1513_p8 }
 0x38f   :  { %v986_v10 = vpop.xlane.xlu0 %985 }
 0x390   :  { %1334 = vrcp.f32 %v986_v10 }
 0x39a   :  { %v1335_v11 = vpop.eup %1334 }
 0x39b   :  { %v988_v12 = vmul.f32 %v1335_v11, %v1333_v22 }
 0x39d   :  { %989 = vst [vmem:[#allocation13] sm:$0x3] %v988_v12 }
 0x39e   :  { %1523 = shalt.err (!%p1520_p12)
}
 0x39f   :  { %s1524_s12 = scalar_lea.hbm %s1786_s9, 32 }
 0x3a0   :  { %p1525_p13 = scmp.ne.s32.totalorder %s1786_s9, %s1524_s12  ;;  %p1528_p0 = scmp.lt.u32.totalorder %s1524_s12, %s1786_s9 }
 0x3a2   :  { %p1530_p1 = pnand %p1528_p0, %p1525_p13 }
 0x3a4   :  { %1533 = shalt.err (!%p1530_p1)
}
 0x3a5   :  { %999 = dma.vmem_to_hbm [thread:$0]  %s997_s22, 32, %s1786_s9, [#allocation4]  }
 0x3a6   :  { %1542 = dma.done.wait [#allocation4], 32  }
 0x3a7   :  { %1543 = vsyncadd [#allocation4], 4294967264 }
 0x3a8   :  { %1544 = dma.done.wait [#allocation15], 64  }
 0x3a9   :  { %1545 = vsyncadd [#allocation15], 4294967232 }
 0x3aa   :  { %1029 = vsyncpa [#allocation3], 1 }
 0x3ab   :  { %1030 = vsyncpa [#allocation6], 1 }
 0x3ac   :  { %1031 = vsyncpa [#allocation9], 1 }
 0x3ad   :  { %1032 = vsyncpa [#allocation12], 1 }
 0x3ae   :  { %1033 = vsyncpa [#allocation4], 1 }
 0x3af   :  { %1034 = vsyncpa [#allocation15], 1 }

</bundles_post_ra>
